<compile_context>
chip_gen: v7x
topology: tpu7x:2x2x1
jax: 0.10.0
libtpu: 0.0.40
codegen_flags: <defaults>
</compile_context>

<pallas_src>
import functools

import jax
import jax.numpy as jnp
from jax.experimental import pallas as pl
from jax.experimental.pallas import tpu as pltpu


LANE = 128           # lane width; feature / hidden dims padded to this
BIG_NODE_PAD = 512   # node padding in the tiled regime (big-tile friendly)
_MIB = 2 ** 20


def _round_up(x, m):
    return (x + m - 1) // m * m


# ---------------------------------------------------------------------------
# Generation-aware VMEM budgeting (v5e/v6e: 128 MiB physical, v7x: 64 MiB).
# ---------------------------------------------------------------------------
@functools.lru_cache(maxsize=None)
def _vmem_capacity_bytes():
    try:
        info = pltpu.get_tpu_info()
        for name in ("vmem_capacity_bytes", "vmem_size_bytes", "vmem_bytes"):
            v = getattr(info, name, None)
            if v:
                return int(v)
    except Exception:
        pass
    return 64 * _MIB          # conservative fallback = v7x per-core VMEM


def _vmem_budget_bytes():
    # Leave ~25% of physical VMEM for compiler-internal scratch / semaphores:
    # ~48 MiB on v7x, ~96 MiB on v5e/v6e.
    return (_vmem_capacity_bytes() * 3) // 4


def _vmem_limit_bytes(plan_bytes):
    # Scoped limit derived from the actual buffer plan (+25% / +2 MiB
    # headroom), with a small floor and capped at the per-generation budget.
    want = plan_bytes + plan_bytes // 4 + 2 * _MIB
    return int(min(_vmem_budget_bytes(), max(want, 4 * _MIB)))


# ---------------------------------------------------------------------------
# Single-buffered constant-index blocks (no dead second pipeline buffer).
# ---------------------------------------------------------------------------
def _try_single_buffer_spec(block_shape, index_map):
    if not hasattr(pl, "Buffered"):
        return None
    for ctor in (lambda: pl.Buffered(1), lambda: pl.Buffered(buffer_count=1)):
        try:
            return pl.BlockSpec(block_shape, index_map, pipeline_mode=ctor())
        except Exception:
            continue
    return None


_SINGLE_BUFFER_CONSTS = _try_single_buffer_spec((8, 128), lambda i: (0, 0)) is not None
_CONST_BUFS = 1 if _SINGLE_BUFFER_CONSTS else 2


def _const_spec(block_shape, index_map):
    if _SINGLE_BUFFER_CONSTS:
        spec = _try_single_buffer_spec(block_shape, index_map)
        if spec is not None:
            return spec
    return pl.BlockSpec(block_shape, index_map)


# ---------------------------------------------------------------------------
# Kernel A (small-graph regime): the whole forward fused into ONE pallas_call.
#   out = PReLU(A @ (PReLU(A @ (X W1) + b1) W2) + b2)
# ---------------------------------------------------------------------------
def _fused_forward_kernel(a_ref, x_ref, w1_ref, b1_ref, al1_ref,
                          w2_ref, b2_ref, al2_ref, o_ref):
    a = a_ref[...]
    # layer 1: GCNConv + PReLU (bf16 MXU operands, f32 accumulation)
    xw1 = jnp.dot(x_ref[...], w1_ref[...], preferred_element_type=jnp.float32)
    h1 = jnp.dot(a, xw1.astype(jnp.bfloat16),
                 preferred_element_type=jnp.float32) + b1_ref[...]
    h1 = jnp.where(h1 > 0, h1, al1_ref[...] * h1)
    # layer 2
    xw2 = jnp.dot(h1.astype(jnp.bfloat16), w2_ref[...],
                  preferred_element_type=jnp.float32)
    h2 = jnp.dot(a, xw2.astype(jnp.bfloat16),
                 preferred_element_type=jnp.float32) + b2_ref[...]
    o_ref[...] = jnp.where(h2 > 0, h2, al2_ref[...] * h2).astype(o_ref.dtype)


def _fused_plan_bytes(n_pad, f_pad, h_pad):
    ins = (n_pad * n_pad * 2 + n_pad * f_pad * 2          # A_hat, X (bf16)
           + f_pad * h_pad * 2 + h_pad * h_pad * 2        # W1, W2 (bf16)
           + 4 * h_pad * 4)                               # b1, b2, alpha1, alpha2
    out = n_pad * h_pad * 4
    interm = 8 * n_pad * h_pad * 4                        # xw / h temporaries
    return 2 * (ins + out) + interm


def fused_forward(a_bf, x_bf, params):
    n_pad, f_pad = x_bf.shape
    h_pad = params["w1"].shape[1]
    ops = (a_bf, x_bf, params["w1"], params["b1"], params["alpha1"],
           params["w2"], params["b2"], params["alpha2"])

    def origin(i):                         # all operands are 2-D
        return (0, 0)

    flops = (2 * n_pad * f_pad * h_pad + 2 * n_pad * h_pad * h_pad
             + 4 * n_pad * n_pad * h_pad)
    bytes_accessed = int(sum(int(o.size) * o.dtype.itemsize for o in ops)
                         + n_pad * h_pad * 4)

    return pl.pallas_call(
        _fused_forward_kernel,
        out_shape=jax.ShapeDtypeStruct((n_pad, h_pad), jnp.float32),
        grid_spec=pltpu.PrefetchScalarGridSpec(
            num_scalar_prefetch=0,
            grid=(1,),
            in_specs=[pl.BlockSpec(o.shape, origin) for o in ops],
            out_specs=pl.BlockSpec((n_pad, h_pad), origin)),
        compiler_params=pltpu.CompilerParams(
            dimension_semantics=("arbitrary",),
            vmem_limit_bytes=_vmem_limit_bytes(
                _fused_plan_bytes(n_pad, f_pad, h_pad))),
        cost_estimate=pl.CostEstimate(flops=flops, transcendentals=0,
                                      bytes_accessed=bytes_accessed),
    )(*ops)


# ---------------------------------------------------------------------------
# Kernel B (tiled regime, step 1 of a layer): XW = X @ W.
# W is a constant-index, single-buffered VMEM resident; rows tiled at 512.
# ---------------------------------------------------------------------------
def _feature_transform_kernel(x_ref, w_ref, o_ref):
    o_ref[...] = jnp.dot(x_ref[...], w_ref[...],
                         preferred_element_type=jnp.float32).astype(o_ref.dtype)


def feature_transform(x_bf, w_bf):
    n_pad, f_pad = x_bf.shape
    h_pad = w_bf.shape[1]
    tm = max(t for t in (512, 256, 128) if n_pad % t == 0)

    plan = (2 * tm * f_pad * 2                     # X tiles (double-buffered)
            + _CONST_BUFS * f_pad * h_pad * 2      # resident W
            + 2 * tm * h_pad * 2)                  # out tiles
    flops = 2 * n_pad * f_pad * h_pad
    bytes_accessed = int((x_bf.size + w_bf.size + n_pad * h_pad) * 2)

    return pl.pallas_call(
        _feature_transform_kernel,
        out_shape=jax.ShapeDtypeStruct((n_pad, h_pad), jnp.bfloat16),
        grid_spec=pltpu.PrefetchScalarGridSpec(
            num_scalar_prefetch=0,
            grid=(n_pad // tm,),
            in_specs=[pl.BlockSpec((tm, f_pad), lambda i: (i, 0)),
                      _const_spec((f_pad, h_pad), lambda i: (0, 0))],
            out_specs=pl.BlockSpec((tm, h_pad), lambda i: (i, 0))),
        compiler_params=pltpu.CompilerParams(
            dimension_semantics=("parallel",),
            vmem_limit_bytes=_vmem_limit_bytes(plan)),
        cost_estimate=pl.CostEstimate(flops=flops, transcendentals=0,
                                      bytes_accessed=bytes_accessed),
    )(x_bf, w_bf)


# ---------------------------------------------------------------------------
# Kernel C (tiled regime, step 2 of a layer):
#   out = PReLU(A_hat @ XW + b), grid = (row tile, K tile), f32 accumulator.
# XW is kept fully VMEM-resident (constant-index, single-buffered, read from
# HBM once) when it fits the generation-aware budget; otherwise streamed.
# ---------------------------------------------------------------------------
def _gcn_propagate_kernel(a_ref, xw_ref, b_ref, al_ref, o_ref, acc_ref,
                          *, tk, xw_resident):
    k = pl.program_id(1)

    @pl.when(k == 0)
    def _():
        acc_ref[...] = jnp.zeros_like(acc_ref)

    if xw_resident:
        xw = xw_ref[pl.ds(pl.multiple_of(k * tk, tk), tk), :]
    else:
        xw = xw_ref[...]
    acc_ref[...] += jnp.dot(a_ref[...], xw, preferred_element_type=jnp.float32)

    @pl.when(k == pl.num_programs(1) - 1)
    def _():
        h = acc_ref[...] + b_ref[...]                 # bias (f32)
        h = jnp.where(h > 0, h, al_ref[...] * h)      # per-channel PReLU (f32)
        o_ref[...] = h.astype(o_ref.dtype)


def gcn_propagate(a_bf, xw_bf, bias, alpha, out_dtype):
    n_pad = a_bf.shape[0]
    h_pad = xw_bf.shape[1]
    tm = 256 if n_pad % 256 == 0 else 128     # 256 rows fill the 256x256 MXU
    tk = max(t for t in (512, 256, 128) if n_pad % t == 0)
    grid = (n_pad // tm, n_pad // tk)
    out_bytes = jnp.dtype(out_dtype).itemsize

    fixed = (2 * tm * tk * 2                      # A tiles (double-buffered)
             + 2 * tm * h_pad * out_bytes         # out tiles
             + tm * h_pad * 4                     # f32 accumulator scratch
             + _CONST_BUFS * 2 * h_pad * 4)       # bias + alpha
    xw_bytes = n_pad * h_pad * 2
    xw_resident = (fixed + _CONST_BUFS * xw_bytes + 4 * _MIB
                   <= _vmem_budget_bytes())

    if xw_resident:
        xw_spec = _const_spec((n_pad, h_pad), lambda i, k: (0, 0))
        plan = fixed + _CONST_BUFS * xw_bytes
        xw_traffic = xw_bytes                      # read from HBM exactly once
    else:
        xw_spec = pl.BlockSpec((tk, h_pad), lambda i, k: (k, 0))
        plan = fixed + 2 * tk * h_pad * 2
        xw_traffic = xw_bytes * (n_pad // tm)      # re-streamed per row tile

    flops = 2 * n_pad * n_pad * h_pad
    bytes_accessed = int(a_bf.size * 2 + xw_traffic + n_pad * h_pad * out_bytes)

    kernel = functools.partial(_gcn_propagate_kernel, tk=tk,
                               xw_resident=xw_resident)
    return pl.pallas_call(
        kernel,
        out_shape=jax.ShapeDtypeStruct((n_pad, h_pad), out_dtype),
        grid_spec=pltpu.PrefetchScalarGridSpec(
            num_scalar_prefetch=0,
            grid=grid,
            in_specs=[pl.BlockSpec((tm, tk), lambda i, k: (i, k)),
                      xw_spec,
                      _const_spec((1, h_pad), lambda i, k: (0, 0)),
                      _const_spec((1, h_pad), lambda i, k: (0, 0))],
            out_specs=pl.BlockSpec((tm, h_pad), lambda i, k: (i, 0)),
            scratch_shapes=[pltpu.VMEM((tm, h_pad), jnp.float32)]),
        compiler_params=pltpu.CompilerParams(
            dimension_semantics=("parallel", "arbitrary"),
            vmem_limit_bytes=_vmem_limit_bytes(plan)),
        cost_estimate=pl.CostEstimate(flops=flops, transcendentals=0,
                                      bytes_accessed=bytes_accessed),
    )(a_bf, xw_bf, bias, alpha)


# ---------------------------------------------------------------------------
# Full encoder forward: conv1 -> PReLU -> conv2 -> PReLU.
# Inputs are pre-cast OUTSIDE this jit (A/X/W bf16, bias/alpha f32).
# ---------------------------------------------------------------------------
@functools.partial(jax.jit, static_argnames=("force_path",))
def dgi_encoder_forward(a_hat_bf, x_bf, params, force_path=None):
    n_pad, f_pad = x_bf.shape
    h_pad = params["w1"].shape[1]
    fused_fits = (_fused_plan_bytes(n_pad, f_pad, h_pad)
                  <= _vmem_budget_bytes() // 2)
    use_fused = (force_path == "fused") or (force_path is None and fused_fits)

    if use_fused:
        return fused_forward(a_hat_bf, x_bf, params)

    xw1 = feature_transform(x_bf, params["w1"])                       # [Np,Hp] bf16
    h1 = gcn_propagate(a_hat_bf, xw1, params["b1"], params["alpha1"],
                       out_dtype=jnp.bfloat16)                        # [Np,Hp] bf16
    xw2 = feature_transform(h1, params["w2"])                         # [Np,Hp] bf16
    return gcn_propagate(a_hat_bf, xw2, params["b2"], params["alpha2"],
                         out_dtype=jnp.float32)                       # [Np,Hp] f32


# ---------------------------------------------------------------------------
# Graph preprocessing (hoisted out of the per-step path; graph is static).
# ---------------------------------------------------------------------------
def dense_gcn_norm(edge_index, num_nodes):
    """Dense A_hat = D^{-1/2}(A + I)D^{-1/2}; PyG gcn_norm semantics
    (messages summed, self-loops added only where missing).  f32, unpadded."""
    src, dst = edge_index[0], edge_index[1]
    a = jnp.zeros((num_nodes, num_nodes), jnp.float32).at[dst, src].add(1.0)
    diag = jnp.diagonal(a)
    a = a + jnp.diag(jnp.where(diag == 0.0, 1.0, 0.0))
    deg = jnp.sum(a, axis=1)
    dinv = jnp.where(deg > 0, 1.0 / jnp.sqrt(deg), 0.0)
    return dinv[:, None] * a * dinv[None, :]


def build_a_hat(edge_index, num_nodes, num_nodes_padded):
    """Padded, bf16-cast A_hat built ONCE per graph."""
    a = dense_gcn_norm(edge_index, num_nodes)
    a_pad = jnp.zeros((num_nodes_padded, num_nodes_padded), jnp.float32)
    a_pad = a_pad.at[:num_nodes, :num_nodes].set(a)
    return a_pad.astype(jnp.bfloat16)


def make_params(key, in_channels, hidden_channels, f_pad, h_pad):
    """GCNConv glorot W + zero bias, PReLU alpha=0.25.  Returns (raw f32 params
    for the reference, zero-padded kernel params pre-cast to kernel dtypes)."""
    k1, k2 = jax.random.split(key)

    def glorot(k, fan_in, fan_out):
        limit = jnp.sqrt(6.0 / (fan_in + fan_out))
        return jax.random.uniform(k, (fan_in, fan_out), jnp.float32, -limit, limit)

    raw = {
        "w1": glorot(k1, in_channels, hidden_channels),
        "b1": jnp.zeros((hidden_channels,), jnp.float32),
        "alpha1": jnp.full((hidden_channels,), 0.25, jnp.float32),
        "w2": glorot(k2, hidden_channels, hidden_channels),
        "b2": jnp.zeros((hidden_channels,), jnp.float32),
        "alpha2": jnp.full((hidden_channels,), 0.25, jnp.float32),
    }

    def pad_mat(w, rows, cols):
        return jnp.zeros((rows, cols), jnp.float32).at[:w.shape[0], :w.shape[1]].set(w)

    def pad_row(v):
        return jnp.zeros((1, h_pad), jnp.float32).at[0, :v.shape[0]].set(v)

    padded = {
        "w1": pad_mat(raw["w1"], f_pad, h_pad).astype(jnp.bfloat16),   # cast once
        "b1": pad_row(raw["b1"]),
        "alpha1": pad_row(raw["alpha1"]),
        "w2": pad_mat(raw["w2"], h_pad, h_pad).astype(jnp.bfloat16),
        "b2": pad_row(raw["b2"]),
        "alpha2": pad_row(raw["alpha2"]),
    }
    return raw, padded


def reference_forward(a_hat_f32, x_f32, raw):
    """Pure-JAX f32 reference of the PyTorch module (validation only)."""
    h = a_hat_f32 @ (x_f32 @ raw["w1"]) + raw["b1"]
    h = jnp.where(h > 0, h, raw["alpha1"] * h)
    h = a_hat_f32 @ (h @ raw["w2"]) + raw["b2"]
    return jnp.where(h > 0, h, raw["alpha2"] * h)


def _ring_graph(num_nodes):
    idx = jnp.arange(num_nodes, dtype=jnp.int32)
    nxt = (idx + 1) % num_nodes
    return jnp.stack([jnp.concatenate([idx, nxt]),
                      jnp.concatenate([nxt, idx])], axis=0)     # [2, 2N]


def _run_case(key, num_nodes, in_channels, hidden_channels, force_path):
    f_pad = _round_up(in_channels, LANE)
    h_pad = _round_up(hidden_channels, LANE)
    n_pad = _round_up(num_nodes, LANE)
    fused_fits = (_fused_plan_bytes(n_pad, f_pad, h_pad)
                  <= _vmem_budget_bytes() // 2)
    if force_path == "tiled" or (force_path is None and not fused_fits):
        n_pad = _round_up(num_nodes, BIG_NODE_PAD)   # big-tile friendly padding

    kx, kp = jax.random.split(key)
    x = jax.random.normal(kx, (num_nodes, in_channels), jnp.float32)
    x_pad = jnp.zeros((n_pad, f_pad), jnp.float32)
    x_pad = x_pad.at[:num_nodes, :in_channels].set(x)
    x_bf = x_pad.astype(jnp.bfloat16)                # cast ONCE, outside the forward

    edge_index = _ring_graph(num_nodes)
    a_hat_bf = build_a_hat(edge_index, num_nodes, n_pad)

    raw, params = make_params(kp, in_channels, hidden_channels, f_pad, h_pad)

    out_pad = dgi_encoder_forward(a_hat_bf, x_bf, params, force_path=force_path)
    jax.block_until_ready(out_pad)
    out = out_pad[:num_nodes, :hidden_channels]
    assert out.shape == (num_nodes, hidden_channels)
    assert out.dtype == jnp.float32

    ref = reference_forward(dense_gcn_norm(edge_index, num_nodes), x, raw)
    err = float(jnp.max(jnp.abs(out - ref)))
    tol = 0.05 * (float(jnp.max(jnp.abs(ref))) + 1.0)   # loose: bf16 operands
    assert err <= tol, f"max abs err {err} > tol {tol}"
    return out


if __name__ == "__main__":
    key = jax.random.PRNGKey(0)
    k1, k2 = jax.random.split(key)

    # Toy scale (matches the module spec): single fused pallas_call.
    _run_case(k1, num_nodes=16, in_channels=4, hidden_channels=32,
              force_path=None)

    # Larger graph: exercises the tiled path (512-wide tiles, VMEM-resident XW).
    _run_case(k2, num_nodes=1024, in_channels=4, hidden_channels=32,
              force_path="tiled")

    print("KERNEL_OK")
</pallas_src>

<mosaic_0001>
module attributes {stable_mosaic.version = 11 : i64} {
  func.func @_fused_forward_kernel(%arg0: i32, %arg1: memref<128x128xbf16, #tpu.memory_space<vmem>>, %arg2: memref<128x128xbf16, #tpu.memory_space<vmem>>, %arg3: memref<128x128xbf16, #tpu.memory_space<vmem>>, %arg4: memref<1x128xf32, #tpu.memory_space<vmem>>, %arg5: memref<1x128xf32, #tpu.memory_space<vmem>>, %arg6: memref<128x128xbf16, #tpu.memory_space<vmem>>, %arg7: memref<1x128xf32, #tpu.memory_space<vmem>>, %arg8: memref<1x128xf32, #tpu.memory_space<vmem>>, %arg9: memref<128x128xf32, #tpu.memory_space<vmem>>) attributes {dimension_semantics = [#tpu.dimension_semantics<arbitrary>], iteration_bounds = array<i64: 1>, scalar_prefetch = 0 : i64, scratch_operands = 0 : i64, tpu.core_type = #tpu.core_type<tc>, window_params = [{pipeline_mode = #tpu.pipeline_mode<synchronous>, transform_indices = @transform_0, window_bounds = array<i64: 128, 128>}, {pipeline_mode = #tpu.pipeline_mode<synchronous>, transform_indices = @transform_1, window_bounds = array<i64: 128, 128>}, {pipeline_mode = #tpu.pipeline_mode<synchronous>, transform_indices = @transform_2, window_bounds = array<i64: 128, 128>}, {pipeline_mode = #tpu.pipeline_mode<synchronous>, transform_indices = @transform_3, window_bounds = array<i64: 1, 128>}, {pipeline_mode = #tpu.pipeline_mode<synchronous>, transform_indices = @transform_4, window_bounds = array<i64: 1, 128>}, {pipeline_mode = #tpu.pipeline_mode<synchronous>, transform_indices = @transform_5, window_bounds = array<i64: 128, 128>}, {pipeline_mode = #tpu.pipeline_mode<synchronous>, transform_indices = @transform_6, window_bounds = array<i64: 1, 128>}, {pipeline_mode = #tpu.pipeline_mode<synchronous>, transform_indices = @transform_7, window_bounds = array<i64: 1, 128>}, {pipeline_mode = #tpu.pipeline_mode<synchronous>, transform_indices = @transform_8, window_bounds = array<i64: 128, 128>}]} {
    %c0 = arith.constant 0 : index
    %c0_0 = arith.constant 0 : index
    %0 = vector.load %arg1[%c0, %c0_0] : memref<128x128xbf16, #tpu.memory_space<vmem>>, vector<128x128xbf16>
    %c0_1 = arith.constant 0 : index
    %c0_2 = arith.constant 0 : index
    %1 = vector.load %arg2[%c0_1, %c0_2] : memref<128x128xbf16, #tpu.memory_space<vmem>>, vector<128x128xbf16>
    %c0_3 = arith.constant 0 : index
    %c0_4 = arith.constant 0 : index
    %2 = vector.load %arg3[%c0_3, %c0_4] : memref<128x128xbf16, #tpu.memory_space<vmem>>, vector<128x128xbf16>
    %cst = arith.constant dense<0.000000e+00> : vector<128x128xf32>
    %3 = tpu.matmul %1, %2, %cst {dimension_numbers = #tpu.dot_dimension_numbers<[1], [0], [0], [1], [0, 0, 1, 1], [], []>} : vector<128x128xbf16>, vector<128x128xbf16>, vector<128x128xf32> -> vector<128x128xf32>
    %4 = arith.truncf %3 : vector<128x128xf32> to vector<128x128xbf16>
    %cst_5 = arith.constant dense<0.000000e+00> : vector<128x128xf32>
    %5 = tpu.matmul %0, %4, %cst_5 {dimension_numbers = #tpu.dot_dimension_numbers<[1], [0], [0], [1], [0, 0, 1, 1], [], []>} : vector<128x128xbf16>, vector<128x128xbf16>, vector<128x128xf32> -> vector<128x128xf32>
    %c0_6 = arith.constant 0 : index
    %c0_7 = arith.constant 0 : index
    %6 = vector.load %arg4[%c0_6, %c0_7] : memref<1x128xf32, #tpu.memory_space<vmem>>, vector<1x128xf32>
    %7 = vector.broadcast %6 : vector<1x128xf32> to vector<128x128xf32>
    %8 = arith.addf %5, %7 : vector<128x128xf32>
    %cst_8 = arith.constant 0.000000e+00 : f32
    %9 = vector.broadcast %cst_8 : f32 to vector<128x128xf32>
    %10 = arith.cmpf ogt, %8, %9 : vector<128x128xf32>
    %c0_9 = arith.constant 0 : index
    %c0_10 = arith.constant 0 : index
    %11 = vector.load %arg5[%c0_9, %c0_10] : memref<1x128xf32, #tpu.memory_space<vmem>>, vector<1x128xf32>
    %12 = vector.broadcast %11 : vector<1x128xf32> to vector<128x128xf32>
    %13 = arith.mulf %12, %8 : vector<128x128xf32>
    %14 = arith.select %10, %8, %13 : vector<128x128xi1>, vector<128x128xf32>
    %15 = arith.truncf %14 : vector<128x128xf32> to vector<128x128xbf16>
    %c0_11 = arith.constant 0 : index
    %c0_12 = arith.constant 0 : index
    %16 = vector.load %arg6[%c0_11, %c0_12] : memref<128x128xbf16, #tpu.memory_space<vmem>>, vector<128x128xbf16>
    %cst_13 = arith.constant dense<0.000000e+00> : vector<128x128xf32>
    %17 = tpu.matmul %15, %16, %cst_13 {dimension_numbers = #tpu.dot_dimension_numbers<[1], [0], [0], [1], [0, 0, 1, 1], [], []>} : vector<128x128xbf16>, vector<128x128xbf16>, vector<128x128xf32> -> vector<128x128xf32>
    %18 = arith.truncf %17 : vector<128x128xf32> to vector<128x128xbf16>
    %cst_14 = arith.constant dense<0.000000e+00> : vector<128x128xf32>
    %19 = tpu.matmul %0, %18, %cst_14 {dimension_numbers = #tpu.dot_dimension_numbers<[1], [0], [0], [1], [0, 0, 1, 1], [], []>} : vector<128x128xbf16>, vector<128x128xbf16>, vector<128x128xf32> -> vector<128x128xf32>
    %c0_15 = arith.constant 0 : index
    %c0_16 = arith.constant 0 : index
    %20 = vector.load %arg7[%c0_15, %c0_16] : memref<1x128xf32, #tpu.memory_space<vmem>>, vector<1x128xf32>
    %21 = vector.broadcast %20 : vector<1x128xf32> to vector<128x128xf32>
    %22 = arith.addf %19, %21 : vector<128x128xf32>
    %cst_17 = arith.constant 0.000000e+00 : f32
    %23 = vector.broadcast %cst_17 : f32 to vector<128x128xf32>
    %24 = arith.cmpf ogt, %22, %23 : vector<128x128xf32>
    %c0_18 = arith.constant 0 : index
    %c0_19 = arith.constant 0 : index
    %25 = vector.load %arg8[%c0_18, %c0_19] : memref<1x128xf32, #tpu.memory_space<vmem>>, vector<1x128xf32>
    %26 = vector.broadcast %25 : vector<1x128xf32> to vector<128x128xf32>
    %27 = arith.mulf %26, %22 : vector<128x128xf32>
    %28 = arith.select %24, %22, %27 : vector<128x128xi1>, vector<128x128xf32>
    %c0_20 = arith.constant 0 : index
    %c0_21 = arith.constant 0 : index
    %29 = vector.load %arg9[%c0_20, %c0_21] : memref<128x128xf32, #tpu.memory_space<vmem>>, vector<128x128xf32>
    tpu.vector_store %arg9[%c0_20, %c0_21], %28 {strides = array<i32>} : memref<128x128xf32, #tpu.memory_space<vmem>>, vector<128x128xf32>,
    return
  }
  func.func @transform_0(%arg0: i32) -> (i32, i32) {
    %c0_i32 = arith.constant 0 : i32
    %c0_i32_0 = arith.constant 0 : i32
    %c0_i32_1 = arith.constant 0 : i32
    return %c0_i32, %c0_i32_0 : i32, i32
  }
  func.func @transform_1(%arg0: i32) -> (i32, i32) {
    %c0_i32 = arith.constant 0 : i32
    %c0_i32_0 = arith.constant 0 : i32
    %c0_i32_1 = arith.constant 0 : i32
    return %c0_i32, %c0_i32_0 : i32, i32
  }
  func.func @transform_2(%arg0: i32) -> (i32, i32) {
    %c0_i32 = arith.constant 0 : i32
    %c0_i32_0 = arith.constant 0 : i32
    %c0_i32_1 = arith.constant 0 : i32
    return %c0_i32, %c0_i32_0 : i32, i32
  }
  func.func @transform_3(%arg0: i32) -> (i32, i32) {
    %c0_i32 = arith.constant 0 : i32
    %c0_i32_0 = arith.constant 0 : i32
    %c0_i32_1 = arith.constant 0 : i32
    return %c0_i32, %c0_i32_0 : i32, i32
  }
  func.func @transform_4(%arg0: i32) -> (i32, i32) {
    %c0_i32 = arith.constant 0 : i32
    %c0_i32_0 = arith.constant 0 : i32
    %c0_i32_1 = arith.constant 0 : i32
    return %c0_i32, %c0_i32_0 : i32, i32
  }
  func.func @transform_5(%arg0: i32) -> (i32, i32) {
    %c0_i32 = arith.constant 0 : i32
    %c0_i32_0 = arith.constant 0 : i32
    %c0_i32_1 = arith.constant 0 : i32
    return %c0_i32, %c0_i32_0 : i32, i32
  }
  func.func @transform_6(%arg0: i32) -> (i32, i32) {
    %c0_i32 = arith.constant 0 : i32
    %c0_i32_0 = arith.constant 0 : i32
    %c0_i32_1 = arith.constant 0 : i32
    return %c0_i32, %c0_i32_0 : i32, i32
  }
  func.func @transform_7(%arg0: i32) -> (i32, i32) {
    %c0_i32 = arith.constant 0 : i32
    %c0_i32_0 = arith.constant 0 : i32
    %c0_i32_1 = arith.constant 0 : i32
    return %c0_i32, %c0_i32_0 : i32, i32
  }
  func.func @transform_8(%arg0: i32) -> (i32, i32) {
    %c0_i32 = arith.constant 0 : i32
    %c0_i32_0 = arith.constant 0 : i32
    %c0_i32_1 = arith.constant 0 : i32
    return %c0_i32, %c0_i32_0 : i32, i32
  }
}

</mosaic_0001>

<bundles_post_ra>
// kernel: dgi_encoder_forward.1
= control target key start
LH: loop header
LB: loop body
LE: loop exit
PB: predicated region body
PF: predicated region fallthrough
CT: control target
= control target key end

     0   :  { %13 = vsyncpa [#allocation3], 0  ;;  %s1556_s0 = inlined_call_operand.hbm [shape: bf16[128,128], index: 0, kind: input, shape index: {}]   ;;  %s1557_s1 = inlined_call_operand.hbm [shape: bf16[128,128], index: 1, kind: input, shape index: {}]   ;;  %s1558_s2 = inlined_call_operand.hbm [shape: bf16[128,128], index: 2, kind: input, shape index: {}]   ;;  %s1559_s3 = inlined_call_operand.vmem [shape: f32[1,128], index: 3, kind: input, shape index: {}]   ;;  %s1560_s4 = inlined_call_operand.vmem [shape: f32[1,128], index: 4, kind: input, shape index: {}]   ;;  %s1561_s5 = inlined_call_operand.hbm [shape: bf16[128,128], index: 5, kind: input, shape index: {}]   ;;  %s1562_s6 = inlined_call_operand.vmem [shape: f32[1,128], index: 6, kind: input, shape index: {}]   ;;  %s1563_s7 = inlined_call_operand.vmem [shape: f32[1,128], index: 7, kind: input, shape index: {}]   ;;  %s1564_s8 = inlined_call_operand.hbm [shape: f32[128,128], index: 8, kind: output, shape index: {}]  }
   0x1   :  { %14 = vsyncpa [#allocation6], 0 }
   0x2   :  { %15 = vsyncpa [#allocation9], 0 }
   0x3   :  { %16 = vsyncpa [#allocation4], 0  ;;  %s1300_s27 = smov [#allocation5]   ;;  %s1301_s29 = smov [#allocation2]  }
   0x4   :  { %s34_s28 = sshll.u32 %s1300_s27, 4  ;;  %s22_s30 = sshll.u32 %s1301_s29, 4  ;;  %s35_s28 = int_to_ptr.vmem [resolvable:$true] %s34_s28  ;;  %s1354_s30 = int_to_ptr.vmem [resolvable:$true] %s22_s30 }
   0x5   :  { %s1182_s11 = scalar_lea.hbm %s1557_s1, 1024 }
   0x6   :  { %p1183_p0 = scmp.ne.s32.totalorder %s1557_s1, %s1182_s11  ;;  %p1186_p1 = scmp.lt.u32.totalorder %s1182_s11, %s1557_s1 }
   0x8   :  { %p1188_p2 = pnand %p1186_p1, %p1183_p0 }
   0xa   :  { %1191 = shalt.err (!%p1188_p2)
}
   0xb   :  { %s1192_s16 = scalar_lea.vmem %s35_s28, 1024  ;;  %p1197_p4 = scmp.lt.s32.totalorder %s35_s28, %s35_s28 }
   0xc   :  { %p1193_p3 = scmp.ne.s32.totalorder %s35_s28, %s1192_s16  ;;  %p1198_p5 = scmp.lt.s32.totalorder %s1192_s16, %s1192_s16 }
   0xe   :  { %p1199_p6 = por %p1198_p5, %p1197_p4 }
  0x10   :  { %p1200_p7 = pnand %p1199_p6, %p1193_p3 }
  0x12   :  { %1203 = shalt.err (!%p1200_p7)
}
  0x13   :  { %s1302_s17 = smov 64   ;;  %s1303_s18 = smov 4  }
  0x14   :  { %40 = dma.hbm_to_vmem [thread:$0]  %s1557_s1, 1024, %s35_s28, [#allocation6], %s1302_s17, %s1302_s17, %s1303_s18  }
  0x15   :  { %s1204_s23 = scalar_lea.hbm %s1556_s0, 1024 }
  0x16   :  { %p1205_p8 = scmp.ne.s32.totalorder %s1556_s0, %s1204_s23  ;;  %p1208_p9 = scmp.lt.u32.totalorder %s1204_s23, %s1556_s0 }
  0x18   :  { %p1210_p10 = pnand %p1208_p9, %p1205_p8 }
  0x1a   :  { %1213 = shalt.err (!%p1210_p10)
}
  0x1b   :  { %s1214_s29 = scalar_lea.vmem %s1354_s30, 1024  ;;  %p1219_p12 = scmp.lt.s32.totalorder %s1354_s30, %s1354_s30 }
  0x1c   :  { %p1215_p11 = scmp.ne.s32.totalorder %s1354_s30, %s1214_s29  ;;  %p1220_p13 = scmp.lt.s32.totalorder %s1214_s29, %s1214_s29 }
  0x1e   :  { %p1221_p0 = por %p1220_p13, %p1219_p12 }
  0x20   :  { %p1222_p1 = pnand %p1221_p0, %p1215_p11 }
  0x22   :  { %1225 = shalt.err (!%p1222_p1)
}
  0x23   :  { %28 = dma.hbm_to_vmem [thread:$0]  %s1556_s0, 1024, %s1354_s30, [#allocation3], %s1302_s17, %s1302_s17, %s1303_s18  }
  0x24   :  { %s1304_s9 = smov [#allocation7]   ;;  %s1305_s11 = smov [#allocation8]  }
  0x25   :  { %s46_s10 = sshll.u32 %s1304_s9, 4  ;;  %s62_s12 = sshll.u32 %s1305_s11, 4  ;;  %s47_s10 = int_to_ptr.vmem [resolvable:$true] %s46_s10  ;;  %s1391_s12 = int_to_ptr.vmem [resolvable:$true] %s62_s12 }
  0x26   :  { %s1226_s15 = scalar_lea.hbm %s1558_s2, 1024 }
  0x27   :  { %p1227_p2 = scmp.ne.s32.totalorder %s1558_s2, %s1226_s15  ;;  %p1230_p3 = scmp.lt.u32.totalorder %s1226_s15, %s1558_s2 }
  0x29   :  { %p1232_p4 = pnand %p1230_p3, %p1227_p2 }
  0x2b   :  { %1235 = shalt.err (!%p1232_p4)
}
  0x2c   :  { %s1236_s0 = scalar_lea.vmem %s47_s10, 1024  ;;  %p1241_p6 = scmp.lt.s32.totalorder %s47_s10, %s47_s10 }
  0x2d   :  { %p1237_p5 = scmp.ne.s32.totalorder %s47_s10, %s1236_s0  ;;  %p1242_p7 = scmp.lt.s32.totalorder %s1236_s0, %s1236_s0 }
  0x2f   :  { %p1243_p8 = por %p1242_p7, %p1241_p6 }
  0x31   :  { %p1244_p9 = pnand %p1243_p8, %p1237_p5 }
  0x33   :  { %1247 = shalt.err (!%p1244_p9)
}
  0x34   :  { %52 = dma.hbm_to_vmem [thread:$0]  %s1558_s2, 1024, %s47_s10, [#allocation6], %s1302_s17, %s1302_s17, %s1303_s18  }
  0x35   :  { %s1248_s25 = scalar_lea.hbm %s1561_s5, 1024 }
  0x36   :  { %p1249_p10 = scmp.ne.s32.totalorder %s1561_s5, %s1248_s25  ;;  %p1252_p11 = scmp.lt.u32.totalorder %s1248_s25, %s1561_s5 }
  0x38   :  { %p1254_p12 = pnand %p1252_p11, %p1249_p10 }
  0x3a   :  { %1257 = shalt.err (!%p1254_p12)
}
  0x3b   :  { %s1258_s28 = scalar_lea.vmem %s1391_s12, 1024  ;;  %p1263_p0 = scmp.lt.s32.totalorder %s1391_s12, %s1391_s12 }
  0x3c   :  { %p1259_p13 = scmp.ne.s32.totalorder %s1391_s12, %s1258_s28  ;;  %p1264_p1 = scmp.lt.s32.totalorder %s1258_s28, %s1258_s28 }
  0x3e   :  { %p1265_p2 = por %p1264_p1, %p1263_p0 }
  0x40   :  { %p1266_p3 = pnand %p1265_p2, %p1259_p13 }
  0x42   :  { %1269 = shalt.err (!%p1266_p3)
}
  0x43   :  { %68 = dma.hbm_to_vmem [thread:$0]  %s1561_s5, 1024, %s1391_s12, [#allocation9], %s1302_s17, %s1302_s17, %s1303_s18  }
  0x44   :  { %1292 = dma.done.wait [#allocation3], 1024  }
  0x45   :  { %1293 = vsyncadd [#allocation3], 4294966272 }
  0x46   :  { %1294 = dma.done.wait [#allocation6], 2048  }
  0x47   :  { %1295 = vsyncadd [#allocation6], 4294965248 }
  0x48   :  { %1296 = dma.done.wait [#allocation9], 1024  }
  0x49   :  { %1297 = vsyncadd [#allocation9], 4294966272  ;;  %v1150_v0 = vld [vmem:[#allocation7] sm:$0xff]   ;;  %v1151_v1 = vld [vmem:[#allocation7 + $0x8] sm:$0xff]  }
  0x4a   :  { %1013 = vmatprep.subr.bf16.mxu0 %v1150_v0  ;;  %v1152_v2 = vld [vmem:[#allocation7 + $0x10] sm:$0xff]   ;;  %v1153_v3 = vld [vmem:[#allocation7 + $0x18] sm:$0xff]   ;;  %v1158_v4 = vld [vmem:[#allocation5] sm:$0xff]  }
  0x4b   :  { %1014 = vmatpush3.bf16.msra.mxu0 %v1150_v0  ;;  %1029 = vmatprep.mubr.bf16.mxu0 %v1158_v4  ;;  %v1154_v5 = vld [vmem:[#allocation7 + $0x20] sm:$0xff]   ;;  %v1155_v6 = vld [vmem:[#allocation7 + $0x28] sm:$0xff]   ;;  %v1156_v7 = vld [vmem:[#allocation7 + $0x30] sm:$0xff]  }
  0x4c   :  { %1015 = vmatprep.subr.bf16.mxu0 %v1151_v1  ;;  %v1157_v8 = vld [vmem:[#allocation7 + $0x38] sm:$0xff]   ;;  %v1159_v9 = vld [vmem:[#allocation5 + $0x8] sm:$0xff]   ;;  %v1160_v10 = vld [vmem:[#allocation5 + $0x10] sm:$0xff]  }
  0x4d   :  { %v1161_v11 = vld [vmem:[#allocation5 + $0x18] sm:$0xff]   ;;  %v1162_v12 = vld [vmem:[#allocation5 + $0x20] sm:$0xff]   ;;  %v1163_v13 = vld [vmem:[#allocation5 + $0x28] sm:$0xff]  }
  0x4e   :  { %v1164_v14 = vld [vmem:[#allocation5 + $0x30] sm:$0xff]   ;;  %v1165_v15 = vld [vmem:[#allocation5 + $0x38] sm:$0xff]   ;;  %v1428_v16 = vld [vmem:[#allocation2] sm:$0xff]  }
  0x4f   :  { %1016 = vmatpush3.bf16.msra.mxu0 %v1151_v1  ;;  %1061 = vmatprep.mubr.bf16.mxu1 %v1428_v16  ;;  %v1174_v17 = vld [vmem:[#allocation8] sm:$0xff]   ;;  %v1175_v18 = vld [vmem:[#allocation8 + $0x8] sm:$0xff]   ;;  %v1176_v19 = vld [vmem:[#allocation8 + $0x10] sm:$0xff]  }
  0x50   :  { %1017 = vmatprep.subr.bf16.mxu0 %v1152_v2  ;;  %v1177_v20 = vld [vmem:[#allocation8 + $0x18] sm:$0xff]   ;;  %v1178_v21 = vld [vmem:[#allocation8 + $0x20] sm:$0xff]   ;;  %v1431_v46 = vld [vmem:[#allocation2 + $0x8] sm:$0xff]  }
  0x51   :  { %v1433_v47 = vld [vmem:[#allocation2 + $0x10] sm:$0xff]   ;;  %v1437_v48 = vld [vmem:[#allocation2 + $0x18] sm:$0xff]   ;;  %v1439_v49 = vld [vmem:[#allocation2 + $0x20] sm:$0xff]  }
  0x52   :  { %v1443_v50 = vld [vmem:[#allocation2 + $0x28] sm:$0xff]   ;;  %v1445_v51 = vld [vmem:[#allocation2 + $0x30] sm:$0xff]   ;;  %v1449_v52 = vld [vmem:[#allocation2 + $0x38] sm:$0xff]  }
  0x53   :  { %1018 = vmatpush3.bf16.msra.mxu0 %v1152_v2  ;;  %v1179_v53 = vld [vmem:[#allocation8 + $0x28] sm:$0xff]   ;;  %v1180_v54 = vld [vmem:[#allocation8 + $0x30] sm:$0xff]   ;;  %v1181_v55 = vld [vmem:[#allocation8 + $0x38] sm:$0xff]  }
  0x54   :  { %1019 = vmatprep.subr.bf16.mxu0 %v1153_v3  ;;  %v1456_v56 = vld [vmem:[%s1559_s3] ss:$0 sm:$0xff] }
  0x55   :  { %v1461_v58 = vld [vmem:[%s1560_s4] ss:$0 sm:$0xff] }
  0x57   :  { %1020 = vmatpush3.bf16.msra.mxu0 %v1153_v3 }
  0x58   :  { %1021 = vmatprep.subr.bf16.mxu0 %v1154_v5 }
  0x5b   :  { %1022 = vmatpush3.bf16.msra.mxu0 %v1154_v5 }
  0x5c   :  { %1023 = vmatprep.subr.bf16.mxu0 %v1155_v6 }
  0x5f   :  { %1024 = vmatpush3.bf16.msra.mxu0 %v1155_v6 }
  0x60   :  { %1025 = vmatprep.subr.bf16.mxu0 %v1156_v7 }
  0x63   :  { %1026 = vmatpush3.bf16.msra.mxu0 %v1156_v7 }
  0x64   :  { %1027 = vmatprep.subr.bf16.mxu0 %v1157_v8 }
  0x67   :  { %1028 = vmatpush3.bf16.msra.mxu0 %v1157_v8 }
  0x68   :  { %1077 = vmatprep.subr.bf16.mxu0 %v1174_v17 }
  0x6a   :  { %1030 = vmatmul.mubr.bf16.vlgmr.msra.gmra.mrb[0].mxu0 %v1159_v9 }
  0x6b   :  { %1033 = vmatprep.mubr.bf16.mxu0 %v1160_v10  ;;  %1078 = vmatpush3.bf16.msra.mxu0 %v1174_v17 }
  0x6c   :  { %1079 = vmatprep.subr.bf16.mxu0 %v1175_v18 }
  0x6f   :  { %1080 = vmatpush3.bf16.msra.mxu0 %v1175_v18 }
  0x70   :  { %1081 = vmatprep.subr.bf16.mxu0 %v1176_v19 }
  0x72   :  { %1034 = vmatmul.mubr.bf16.gmra.mrb[4].mxu0 %v1161_v11 }
  0x73   :  { %1037 = vmatprep.mubr.bf16.mxu0 %v1162_v12  ;;  %1082 = vmatpush3.bf16.msra.mxu0 %v1176_v19 }
  0x74   :  { %1083 = vmatprep.subr.bf16.mxu0 %v1177_v20 }
  0x77   :  { %1084 = vmatpush3.bf16.msra.mxu0 %v1177_v20 }
  0x78   :  { %1085 = vmatprep.subr.bf16.mxu0 %v1178_v21 }
  0x7a   :  { %1038 = vmatmul.mubr.bf16.gmra.mrb[8].mxu0 %v1163_v13 }
  0x7b   :  { %1041 = vmatprep.mubr.bf16.mxu0 %v1164_v14  ;;  %1086 = vmatpush3.bf16.msra.mxu0 %v1178_v21 }
  0x7c   :  { %1087 = vmatprep.subr.bf16.mxu0 %v1179_v53 }
  0x7f   :  { %1088 = vmatpush3.bf16.msra.mxu0 %v1179_v53 }
  0x80   :  { %1089 = vmatprep.subr.bf16.mxu0 %v1180_v54 }
  0x82   :  { %1042 = vmatmul.mubr.bf16.gmra.mrb[12].mxu0 %v1165_v15 }
  0x83   :  { %1090 = vmatpush3.bf16.msra.mxu0 %v1180_v54 }
  0x84   :  { %1091 = vmatprep.subr.bf16.mxu0 %v1181_v55 }
  0x87   :  { %1092 = vmatpush3.bf16.msra.mxu0 %v1181_v55 }
 0x13d   :  { %v1031_v22 = vpop.f32.mrb[0].mxu0 }
 0x13e   :  { %v264_v23 = vpop.f32.mrb[1].mxu0 }
 0x13f   :  { %v1032_v24 = vpop.f32.mrb[2].mxu0 }
 0x140   :  { %v328_v25 = vpack.c.bf16 %v1032_v24, %v1031_v22  ;;  %v267_v26 = vpop.f32.mrb[3].mxu0 }
 0x141   :  { %v327_v27 = vpack.c.bf16 %v267_v26, %v264_v23 }
 0x143   :  { %1045 = vmatprep.subr.bf16.mxu1 %v327_v27 }
 0x144   :  { %1046 = vmatpush3.bf16.msra.mxu1 %v327_v27 }
 0x145   :  { %v1035_v28 = vpop.f32.mrb[4].mxu0  ;;  %1047 = vmatprep.subr.bf16.mxu1 %v328_v25 }
 0x146   :  { %v280_v29 = vpop.f32.mrb[5].mxu0 }
 0x147   :  { %v1036_v30 = vpop.f32.mrb[6].mxu0 }
 0x148   :  { %v330_v31 = vpack.c.bf16 %v1036_v30, %v1035_v28  ;;  %v283_v32 = vpop.f32.mrb[7].mxu0  ;;  %1048 = vmatpush3.bf16.msra.mxu1 %v328_v25 }
 0x149   :  { %v329_v33 = vpack.c.bf16 %v283_v32, %v280_v29 }
 0x14b   :  { %1049 = vmatprep.subr.bf16.mxu1 %v329_v33 }
 0x14c   :  { %1050 = vmatpush3.bf16.msra.mxu1 %v329_v33 }
 0x14d   :  { %v1039_v34 = vpop.f32.mrb[8].mxu0  ;;  %1051 = vmatprep.subr.bf16.mxu1 %v330_v31 }
 0x14e   :  { %v296_v35 = vpop.f32.mrb[9].mxu0 }
 0x14f   :  { %v1040_v36 = vpop.f32.mrb[10].mxu0 }
 0x150   :  { %v332_v37 = vpack.c.bf16 %v1040_v36, %v1039_v34  ;;  %v299_v38 = vpop.f32.mrb[11].mxu0  ;;  %1052 = vmatpush3.bf16.msra.mxu1 %v330_v31 }
 0x151   :  { %v331_v39 = vpack.c.bf16 %v299_v38, %v296_v35 }
 0x153   :  { %1053 = vmatprep.subr.bf16.mxu1 %v331_v39 }
 0x154   :  { %1054 = vmatpush3.bf16.msra.mxu1 %v331_v39 }
 0x155   :  { %v1043_v40 = vpop.f32.mrb[12].mxu0  ;;  %1055 = vmatprep.subr.bf16.mxu1 %v332_v37 }
 0x156   :  { %v312_v41 = vpop.f32.mrb[13].mxu0 }
 0x157   :  { %v1044_v42 = vpop.f32.mrb[14].mxu0 }
 0x158   :  { %v334_v43 = vpack.c.bf16 %v1044_v42, %v1043_v40  ;;  %v315_v44 = vpop.f32.mrb[15].mxu0  ;;  %1056 = vmatpush3.bf16.msra.mxu1 %v332_v37 }
 0x159   :  { %v333_v45 = vpack.c.bf16 %v315_v44, %v312_v41 }
 0x15b   :  { %1057 = vmatprep.subr.bf16.mxu1 %v333_v45 }
 0x15c   :  { %1058 = vmatpush3.bf16.msra.mxu1 %v333_v45 }
 0x15d   :  { %1059 = vmatprep.subr.bf16.mxu1 %v334_v43 }
 0x160   :  { %1060 = vmatpush3.bf16.msra.mxu1 %v334_v43 }
 0x163   :  { %1062 = vmatmul.mubr.bf16.vlgmr.msra.gmra.mrb[0].mxu1 %v1431_v46 }
 0x164   :  { %1065 = vmatprep.mubr.bf16.mxu1 %v1433_v47 }
 0x16b   :  { %1066 = vmatmul.mubr.bf16.gmra.mrb[4].mxu1 %v1437_v48 }
 0x16c   :  { %1069 = vmatprep.mubr.bf16.mxu1 %v1439_v49 }
 0x173   :  { %1070 = vmatmul.mubr.bf16.gmra.mrb[8].mxu1 %v1443_v50 }
 0x174   :  { %1073 = vmatprep.mubr.bf16.mxu1 %v1445_v51 }
 0x17b   :  { %1074 = vmatmul.mubr.bf16.gmra.mrb[12].mxu1 %v1449_v52 }
 0x17c   :  { %1125 = vmatprep.mubr.bf16.mxu1 %v1428_v16 }
 0x236   :  { %v1063_v57 = vpop.f32.mrb[0].mxu1 }
 0x237   :  { %v433_v59 = vadd.f32 %v1063_v57, %v1456_v56  ;;  %v424_v60 = vpop.f32.mrb[1].mxu1 }
 0x238   :  { %v425_v61 = vadd.f32 %v1456_v56, %v424_v60  ;;  %v1064_v62 = vpop.f32.mrb[2].mxu1 }
 0x239   :  { %v512_v63 = vmul.f32 %v1461_v58, %v433_v59  ;;  %v436_v0 = vadd.f32 %v1064_v62, %v1456_v56  ;;  %v427_v1 = vpop.f32.mrb[3].mxu1  ;;  %vm489_vm0 = vcmp.gt.f32.partialorder %v433_v59, 0.0 }
 0x23a   :  { %v510_v2 = vmul.f32 %v1461_v58, %v425_v61  ;;  %v428_v3 = vadd.f32 %v1456_v56, %v427_v1  ;;  %vm487_vm1 = vcmp.gt.f32.partialorder %v425_v61, 0.0 }
 0x23b   :  { %vm490_vm2 = vcmp.gt.f32.partialorder %v436_v0, 0.0  ;;  %v513_v4 = vmul.f32 %v1461_v58, %v436_v0  ;;  %v528_v6 = vsel %vm489_vm0, %v433_v59, %v512_v63 }
 0x23c   :  { %vm488_vm3 = vcmp.gt.f32.partialorder %v428_v3, 0.0  ;;  %v511_v5 = vmul.f32 %v1461_v58, %v428_v3  ;;  %v526_v10 = vsel %vm487_vm1, %v425_v61, %v510_v2 }
 0x23d   :  { %v529_v7 = vsel %vm490_vm2, %v436_v0, %v513_v4 }
 0x23e   :  { %v543_v8 = vpack.c.bf16 %v529_v7, %v528_v6  ;;  %v1067_v9 = vpop.f32.mrb[4].mxu1  ;;  %v527_v11 = vsel %vm488_vm3, %v428_v3, %v511_v5 }
 0x23f   :  { %v449_v12 = vadd.f32 %v1067_v9, %v1456_v56  ;;  %v440_v13 = vpop.f32.mrb[5].mxu1  ;;  %v542_v14 = vpack.c.bf16 %v527_v11, %v526_v10 }
 0x240   :  { %v441_v15 = vadd.f32 %v1456_v56, %v440_v13  ;;  %v1068_v16 = vpop.f32.mrb[6].mxu1 }
 0x241   :  { %v516_v17 = vmul.f32 %v1461_v58, %v449_v12  ;;  %v452_v18 = vadd.f32 %v1068_v16, %v1456_v56  ;;  %v443_v19 = vpop.f32.mrb[7].mxu1  ;;  %1093 = vmatprep.mubr.bf16.mxu0 %v542_v14  ;;  %vm493_vm4 = vcmp.gt.f32.partialorder %v449_v12, 0.0 }
 0x242   :  { %v514_v20 = vmul.f32 %v1461_v58, %v441_v15  ;;  %v444_v21 = vadd.f32 %v1456_v56, %v443_v19  ;;  %1094 = vmatmul.mubr.bf16.vlgmr.msra.gmra.mrb[16].mxu0 %v543_v8  ;;  %vm491_vm5 = vcmp.gt.f32.partialorder %v441_v15, 0.0 }
 0x243   :  { %vm494_vm6 = vcmp.gt.f32.partialorder %v452_v18, 0.0  ;;  %v517_v22 = vmul.f32 %v1461_v58, %v452_v18  ;;  %v532_v24 = vsel %vm493_vm4, %v449_v12, %v516_v17 }
 0x244   :  { %vm492_vm7 = vcmp.gt.f32.partialorder %v444_v21, 0.0  ;;  %v515_v23 = vmul.f32 %v1461_v58, %v444_v21  ;;  %v530_v27 = vsel %vm491_vm5, %v441_v15, %v514_v20 }
 0x245   :  { %v533_v25 = vsel %vm494_vm6, %v452_v18, %v517_v22 }
 0x246   :  { %v1071_v26 = vpop.f32.mrb[8].mxu1  ;;  %v531_v28 = vsel %vm492_vm7, %v444_v21, %v515_v23  ;;  %v545_v29 = vpack.c.bf16 %v533_v25, %v532_v24 }
 0x247   :  { %v465_v30 = vadd.f32 %v1071_v26, %v1456_v56  ;;  %v456_v31 = vpop.f32.mrb[9].mxu1  ;;  %v544_v32 = vpack.c.bf16 %v531_v28, %v530_v27 }
 0x248   :  { %v457_v33 = vadd.f32 %v1456_v56, %v456_v31  ;;  %v1072_v34 = vpop.f32.mrb[10].mxu1 }
 0x249   :  { %v520_v35 = vmul.f32 %v1461_v58, %v465_v30  ;;  %v468_v36 = vadd.f32 %v1072_v34, %v1456_v56  ;;  %v459_v37 = vpop.f32.mrb[11].mxu1  ;;  %1097 = vmatprep.mubr.bf16.mxu0 %v544_v32  ;;  %vm497_vm8 = vcmp.gt.f32.partialorder %v465_v30, 0.0 }
 0x24a   :  { %v518_v38 = vmul.f32 %v1461_v58, %v457_v33  ;;  %v460_v39 = vadd.f32 %v1456_v56, %v459_v37  ;;  %1098 = vmatmul.mubr.bf16.gmra.mrb[20].mxu0 %v545_v29  ;;  %vm495_vm9 = vcmp.gt.f32.partialorder %v457_v33, 0.0 }
 0x24b   :  { %vm498_vm10 = vcmp.gt.f32.partialorder %v468_v36, 0.0  ;;  %v521_v40 = vmul.f32 %v1461_v58, %v468_v36  ;;  %v536_v42 = vsel %vm497_vm8, %v465_v30, %v520_v35 }
 0x24c   :  { %vm496_vm11 = vcmp.gt.f32.partialorder %v460_v39, 0.0  ;;  %v519_v41 = vmul.f32 %v1461_v58, %v460_v39  ;;  %v534_v45 = vsel %vm495_vm9, %v457_v33, %v518_v38  ;;  %v1505_v33 = vld [vmem:[%s1562_s6] ss:$0 sm:$0xff]  ;;  %s1306_s6 = smov [#allocation10]  }
 0x24d   :  { %v537_v43 = vsel %vm498_vm10, %v468_v36, %v521_v40 }
 0x24e   :  { %v1075_v44 = vpop.f32.mrb[12].mxu1  ;;  %v535_v53 = vsel %vm496_vm11, %v460_v39, %v519_v41  ;;  %v547_v54 = vpack.c.bf16 %v537_v43, %v536_v42 }
 0x24f   :  { %v481_v55 = vadd.f32 %v1075_v44, %v1456_v56  ;;  %v472_v57 = vpop.f32.mrb[13].mxu1  ;;  %v546_v59 = vpack.c.bf16 %v535_v53, %v534_v45 }
 0x250   :  { %v473_v60 = vadd.f32 %v1456_v56, %v472_v57  ;;  %v1076_v61 = vpop.f32.mrb[14].mxu1 }
 0x251   :  { %v524_v62 = vmul.f32 %v1461_v58, %v481_v55  ;;  %v484_v63 = vadd.f32 %v1076_v61, %v1456_v56  ;;  %v475_v0 = vpop.f32.mrb[15].mxu1  ;;  %1101 = vmatprep.mubr.bf16.mxu0 %v546_v59  ;;  %vm501_vm12 = vcmp.gt.f32.partialorder %v481_v55, 0.0 }
 0x252   :  { %v522_v1 = vmul.f32 %v1461_v58, %v473_v60  ;;  %v476_v2 = vadd.f32 %v1456_v56, %v475_v0  ;;  %1102 = vmatmul.mubr.bf16.gmra.mrb[24].mxu0 %v547_v54  ;;  %vm499_vm13 = vcmp.gt.f32.partialorder %v473_v60, 0.0 }
 0x253   :  { %vm502_vm14 = vcmp.gt.f32.partialorder %v484_v63, 0.0  ;;  %v525_v3 = vmul.f32 %v1461_v58, %v484_v63  ;;  %v540_v5 = vsel %vm501_vm12, %v481_v55, %v524_v62 }
 0x254   :  { %vm500_vm15 = vcmp.gt.f32.partialorder %v476_v2, 0.0  ;;  %v523_v4 = vmul.f32 %v1461_v58, %v476_v2  ;;  %v538_v7 = vsel %vm499_vm13, %v473_v60, %v522_v1 }
 0x255   :  { %v541_v6 = vsel %vm502_vm14, %v484_v63, %v525_v3 }
 0x256   :  { %v539_v8 = vsel %vm500_vm15, %v476_v2, %v523_v4  ;;  %v549_v9 = vpack.c.bf16 %v541_v6, %v540_v5 }
 0x257   :  { %v548_v10 = vpack.c.bf16 %v539_v8, %v538_v7 }
 0x259   :  { %1105 = vmatprep.mubr.bf16.mxu0 %v548_v10 }
 0x25a   :  { %1106 = vmatmul.mubr.bf16.gmra.mrb[28].mxu0 %v549_v9 }
 0x315   :  { %v1095_v11 = vpop.f32.mrb[16].mxu0 }
 0x316   :  { %v648_v12 = vpop.f32.mrb[17].mxu0 }
 0x317   :  { %v1096_v13 = vpop.f32.mrb[18].mxu0 }
 0x318   :  { %v712_v56 = vpack.c.bf16 %v1096_v13, %v1095_v11  ;;  %v651_v14 = vpop.f32.mrb[19].mxu0 }
 0x319   :  { %v711_v15 = vpack.c.bf16 %v651_v14, %v648_v12 }
 0x31b   :  { %1109 = vmatprep.subr.bf16.mxu1 %v711_v15 }
 0x31c   :  { %1110 = vmatpush3.bf16.msra.mxu1 %v711_v15 }
 0x31d   :  { %v1099_v16 = vpop.f32.mrb[20].mxu0  ;;  %1111 = vmatprep.subr.bf16.mxu1 %v712_v56 }
 0x31e   :  { %v664_v17 = vpop.f32.mrb[21].mxu0 }
 0x31f   :  { %v1100_v58 = vpop.f32.mrb[22].mxu0 }
 0x320   :  { %v714_v18 = vpack.c.bf16 %v1100_v58, %v1099_v16  ;;  %v667_v19 = vpop.f32.mrb[23].mxu0  ;;  %1112 = vmatpush3.bf16.msra.mxu1 %v712_v56 }
 0x321   :  { %v713_v20 = vpack.c.bf16 %v667_v19, %v664_v17 }
 0x323   :  { %1113 = vmatprep.subr.bf16.mxu1 %v713_v20 }
 0x324   :  { %1114 = vmatpush3.bf16.msra.mxu1 %v713_v20 }
 0x325   :  { %v1103_v21 = vpop.f32.mrb[24].mxu0  ;;  %1115 = vmatprep.subr.bf16.mxu1 %v714_v18 }
 0x326   :  { %v680_v22 = vpop.f32.mrb[25].mxu0 }
 0x327   :  { %v1104_v23 = vpop.f32.mrb[26].mxu0 }
 0x328   :  { %v716_v24 = vpack.c.bf16 %v1104_v23, %v1103_v21  ;;  %v683_v25 = vpop.f32.mrb[27].mxu0  ;;  %1116 = vmatpush3.bf16.msra.mxu1 %v714_v18 }
 0x329   :  { %v715_v26 = vpack.c.bf16 %v683_v25, %v680_v22 }
 0x32b   :  { %1117 = vmatprep.subr.bf16.mxu1 %v715_v26 }
 0x32c   :  { %1118 = vmatpush3.bf16.msra.mxu1 %v715_v26 }
 0x32d   :  { %v1107_v27 = vpop.f32.mrb[28].mxu0  ;;  %1119 = vmatprep.subr.bf16.mxu1 %v716_v24 }
 0x32e   :  { %v696_v28 = vpop.f32.mrb[29].mxu0 }
 0x32f   :  { %v1108_v29 = vpop.f32.mrb[30].mxu0 }
 0x330   :  { %v718_v30 = vpack.c.bf16 %v1108_v29, %v1107_v27  ;;  %v699_v31 = vpop.f32.mrb[31].mxu0  ;;  %1120 = vmatpush3.bf16.msra.mxu1 %v716_v24 }
 0x331   :  { %v717_v32 = vpack.c.bf16 %v699_v31, %v696_v28 }
 0x333   :  { %1121 = vmatprep.subr.bf16.mxu1 %v717_v32 }
 0x334   :  { %1122 = vmatpush3.bf16.msra.mxu1 %v717_v32 }
 0x335   :  { %1123 = vmatprep.subr.bf16.mxu1 %v718_v30 }
 0x338   :  { %1124 = vmatpush3.bf16.msra.mxu1 %v718_v30 }
 0x33b   :  { %1126 = vmatmul.mubr.bf16.vlgmr.msra.gmra.mrb[16].mxu1 %v1431_v46  ;;  %v1510_v46 = vld [vmem:[%s1563_s7] ss:$0 sm:$0xff]  ;;  %s899_s7 = sshll.u32 %s1306_s6, 4  ;;  %s900_s7 = int_to_ptr.vmem [resolvable:$true] %s899_s7 }
 0x33c   :  { %1129 = vmatprep.mubr.bf16.mxu1 %v1433_v47  ;;  %s1270_s13 = scalar_lea.vmem %s900_s7, 2048  ;;  %p1275_p5 = scmp.lt.s32.totalorder %s900_s7, %s900_s7 }
 0x33d   :  { %p1271_p4 = scmp.ne.s32.totalorder %s900_s7, %s1270_s13  ;;  %p1276_p6 = scmp.lt.s32.totalorder %s1270_s13, %s1270_s13 }
 0x33f   :  { %p1277_p7 = por %p1276_p6, %p1275_p5 }
 0x341   :  { %p1278_p8 = pnand %p1277_p7, %p1271_p4 }
 0x343   :  { %1130 = vmatmul.mubr.bf16.gmra.mrb[20].mxu1 %v1437_v48 }
 0x344   :  { %1133 = vmatprep.mubr.bf16.mxu1 %v1439_v49 }
 0x34b   :  { %1134 = vmatmul.mubr.bf16.gmra.mrb[24].mxu1 %v1443_v50 }
 0x34c   :  { %1137 = vmatprep.mubr.bf16.mxu1 %v1445_v51 }
 0x353   :  { %1138 = vmatmul.mubr.bf16.gmra.mrb[28].mxu1 %v1449_v52 }
 0x40e   :  { %v1127_v34 = vpop.f32.mrb[16].mxu1 }
 0x40f   :  { %v769_v47 = vadd.f32 %v1127_v34, %v1505_v33  ;;  %v760_v48 = vpop.f32.mrb[17].mxu1 }
 0x410   :  { %v761_v49 = vadd.f32 %v1505_v33, %v760_v48  ;;  %v1128_v50 = vpop.f32.mrb[18].mxu1 }
 0x411   :  { %vm825_vm0 = vcmp.gt.f32.partialorder %v769_v47, 0.0  ;;  %v848_v51 = vmul.f32 %v1510_v46, %v769_v47  ;;  %v772_v52 = vadd.f32 %v1128_v50, %v1505_v33  ;;  %v763_v35 = vpop.f32.mrb[19].mxu1 }
 0x412   :  { %vm823_vm1 = vcmp.gt.f32.partialorder %v761_v49, 0.0  ;;  %v846_v36 = vmul.f32 %v1510_v46, %v761_v49  ;;  %v764_v37 = vadd.f32 %v1505_v33, %v763_v35 }
 0x413   :  { %v864_v38 = vsel %vm825_vm0, %v769_v47, %v848_v51  ;;  %vm826_vm2 = vcmp.gt.f32.partialorder %v772_v52, 0.0  ;;  %v849_v39 = vmul.f32 %v1510_v46, %v772_v52 }
 0x414   :  { %880 = vst [vmem:[#allocation10 + $0x10] sm:$0xff] %v864_v38  ;;  %v862_v40 = vsel %vm823_vm1, %v761_v49, %v846_v36  ;;  %vm824_vm3 = vcmp.gt.f32.partialorder %v764_v37, 0.0  ;;  %v847_v41 = vmul.f32 %v1510_v46, %v764_v37 }
 0x415   :  { %878 = vst [vmem:[#allocation10] sm:$0xff] %v862_v40  ;;  %v865_v42 = vsel %vm826_vm2, %v772_v52, %v849_v39 }
 0x416   :  { %881 = vst [vmem:[#allocation10 + $0x18] sm:$0xff] %v865_v42  ;;  %v863_v43 = vsel %vm824_vm3, %v764_v37, %v847_v41  ;;  %v1131_v44 = vpop.f32.mrb[20].mxu1 }
 0x417   :  { %879 = vst [vmem:[#allocation10 + $0x8] sm:$0xff] %v863_v43  ;;  %v785_v45 = vadd.f32 %v1131_v44, %v1505_v33  ;;  %v776_v53 = vpop.f32.mrb[21].mxu1 }
 0x418   :  { %v777_v54 = vadd.f32 %v1505_v33, %v776_v53  ;;  %v1132_v55 = vpop.f32.mrb[22].mxu1 }
 0x419   :  { %vm829_vm4 = vcmp.gt.f32.partialorder %v785_v45, 0.0  ;;  %v852_v57 = vmul.f32 %v1510_v46, %v785_v45  ;;  %v788_v59 = vadd.f32 %v1132_v55, %v1505_v33  ;;  %v779_v60 = vpop.f32.mrb[23].mxu1 }
 0x41a   :  { %vm827_vm5 = vcmp.gt.f32.partialorder %v777_v54, 0.0  ;;  %v850_v61 = vmul.f32 %v1510_v46, %v777_v54  ;;  %v780_v62 = vadd.f32 %v1505_v33, %v779_v60 }
 0x41b   :  { %v868_v63 = vsel %vm829_vm4, %v785_v45, %v852_v57  ;;  %vm830_vm6 = vcmp.gt.f32.partialorder %v788_v59, 0.0  ;;  %v853_v0 = vmul.f32 %v1510_v46, %v788_v59 }
 0x41c   :  { %884 = vst [vmem:[#allocation10 + $0x30] sm:$0xff] %v868_v63  ;;  %v866_v1 = vsel %vm827_vm5, %v777_v54, %v850_v61  ;;  %vm828_vm7 = vcmp.gt.f32.partialorder %v780_v62, 0.0  ;;  %v851_v2 = vmul.f32 %v1510_v46, %v780_v62 }
 0x41d   :  { %882 = vst [vmem:[#allocation10 + $0x20] sm:$0xff] %v866_v1  ;;  %v869_v3 = vsel %vm830_vm6, %v788_v59, %v853_v0 }
 0x41e   :  { %885 = vst [vmem:[#allocation10 + $0x38] sm:$0xff] %v869_v3  ;;  %v867_v4 = vsel %vm828_vm7, %v780_v62, %v851_v2  ;;  %v1135_v5 = vpop.f32.mrb[24].mxu1 }
 0x41f   :  { %883 = vst [vmem:[#allocation10 + $0x28] sm:$0xff] %v867_v4  ;;  %v801_v6 = vadd.f32 %v1135_v5, %v1505_v33  ;;  %v792_v7 = vpop.f32.mrb[25].mxu1 }
 0x420   :  { %v793_v8 = vadd.f32 %v1505_v33, %v792_v7  ;;  %v1136_v9 = vpop.f32.mrb[26].mxu1 }
 0x421   :  { %vm833_vm8 = vcmp.gt.f32.partialorder %v801_v6, 0.0  ;;  %v856_v10 = vmul.f32 %v1510_v46, %v801_v6  ;;  %v804_v11 = vadd.f32 %v1136_v9, %v1505_v33  ;;  %v795_v12 = vpop.f32.mrb[27].mxu1 }
 0x422   :  { %vm831_vm9 = vcmp.gt.f32.partialorder %v793_v8, 0.0  ;;  %v854_v13 = vmul.f32 %v1510_v46, %v793_v8  ;;  %v796_v56 = vadd.f32 %v1505_v33, %v795_v12 }
 0x423   :  { %v872_v14 = vsel %vm833_vm8, %v801_v6, %v856_v10  ;;  %vm834_vm10 = vcmp.gt.f32.partialorder %v804_v11, 0.0  ;;  %v857_v15 = vmul.f32 %v1510_v46, %v804_v11 }
 0x424   :  { %888 = vst [vmem:[#allocation10 + $0x50] sm:$0xff] %v872_v14  ;;  %v870_v16 = vsel %vm831_vm9, %v793_v8, %v854_v13  ;;  %vm832_vm11 = vcmp.gt.f32.partialorder %v796_v56, 0.0  ;;  %v855_v17 = vmul.f32 %v1510_v46, %v796_v56 }
 0x425   :  { %886 = vst [vmem:[#allocation10 + $0x40] sm:$0xff] %v870_v16  ;;  %v873_v58 = vsel %vm834_vm10, %v804_v11, %v857_v15 }
 0x426   :  { %889 = vst [vmem:[#allocation10 + $0x58] sm:$0xff] %v873_v58  ;;  %v871_v18 = vsel %vm832_vm11, %v796_v56, %v855_v17  ;;  %v1139_v19 = vpop.f32.mrb[28].mxu1 }
 0x427   :  { %887 = vst [vmem:[#allocation10 + $0x48] sm:$0xff] %v871_v18  ;;  %v817_v20 = vadd.f32 %v1139_v19, %v1505_v33  ;;  %v808_v21 = vpop.f32.mrb[29].mxu1 }
 0x428   :  { %v809_v22 = vadd.f32 %v1505_v33, %v808_v21  ;;  %v1140_v23 = vpop.f32.mrb[30].mxu1 }
 0x429   :  { %vm837_vm12 = vcmp.gt.f32.partialorder %v817_v20, 0.0  ;;  %v860_v24 = vmul.f32 %v1510_v46, %v817_v20  ;;  %v820_v25 = vadd.f32 %v1140_v23, %v1505_v33  ;;  %v811_v26 = vpop.f32.mrb[31].mxu1 }
 0x42a   :  { %vm835_vm13 = vcmp.gt.f32.partialorder %v809_v22, 0.0  ;;  %v858_v27 = vmul.f32 %v1510_v46, %v809_v22  ;;  %v812_v28 = vadd.f32 %v1505_v33, %v811_v26 }
 0x42b   :  { %v876_v29 = vsel %vm837_vm12, %v817_v20, %v860_v24  ;;  %vm838_vm14 = vcmp.gt.f32.partialorder %v820_v25, 0.0  ;;  %v861_v30 = vmul.f32 %v1510_v46, %v820_v25 }
 0x42c   :  { %892 = vst [vmem:[#allocation10 + $0x70] sm:$0xff] %v876_v29  ;;  %v874_v31 = vsel %vm835_vm13, %v809_v22, %v858_v27  ;;  %vm836_vm15 = vcmp.gt.f32.partialorder %v812_v28, 0.0  ;;  %v859_v32 = vmul.f32 %v1510_v46, %v812_v28 }
 0x42d   :  { %890 = vst [vmem:[#allocation10 + $0x60] sm:$0xff] %v874_v31  ;;  %v877_v34 = vsel %vm838_vm14, %v820_v25, %v861_v30 }
 0x42e   :  { %893 = vst [vmem:[#allocation10 + $0x78] sm:$0xff] %v877_v34  ;;  %v875_v47 = vsel %vm836_vm15, %v812_v28, %v859_v32 }
 0x42f   :  { %891 = vst [vmem:[#allocation10 + $0x68] sm:$0xff] %v875_v47 }
 0x430   :  { %1281 = shalt.err (!%p1278_p8)
}
 0x431   :  { %s1282_s16 = scalar_lea.hbm %s1564_s8, 2048 }
 0x432   :  { %p1283_p9 = scmp.ne.s32.totalorder %s1564_s8, %s1282_s16  ;;  %p1286_p10 = scmp.lt.u32.totalorder %s1282_s16, %s1564_s8 }
 0x434   :  { %p1288_p11 = pnand %p1286_p10, %p1283_p9 }
 0x436   :  { %1291 = shalt.err (!%p1288_p11)
}
 0x437   :  { %s1307_s30 = smov 128   ;;  %s1308_s22 = smov 8  }
 0x438   :  { %905 = dma.vmem_to_hbm [thread:$0]  %s900_s7, 2048, %s1564_s8, [#allocation4], %s1307_s30, %s1307_s30, %s1308_s22  }
 0x439   :  { %1298 = dma.done.wait [#allocation4], 2048  }
 0x43a   :  { %1299 = vsyncadd [#allocation4], 4294965248 }
 0x43b   :  { %909 = vsyncpa [#allocation3], 1 }
 0x43c   :  { %910 = vsyncpa [#allocation6], 1 }
 0x43d   :  { %911 = vsyncpa [#allocation9], 1 }
 0x43e   :  { %912 = vsyncpa [#allocation4], 1 }

</bundles_post_ra>
